<compile_context>
chip_gen: v5e
topology: v5e:2x2
jax: 0.10.0
libtpu: 0.0.40
codegen_flags: <defaults>
</compile_context>

<pallas_src>
import math

import jax
import jax.numpy as jnp
from jax.experimental import pallas as pl
from jax.experimental.pallas import tpu as pltpu

_TWO_PI = 2.0 * math.pi


def _gfp_kernel_aligned(x_ref, w_ref, out_ref):
    # x_ref: (TB, 1) f32, w_ref: (1, E) f32, out_ref: (TB, 2E) f32.
    # Requires E % 128 == 0 so both stores are lane-aligned (unmasked).
    e = w_ref.shape[1]
    x_proj = x_ref[...] * (w_ref[...] * _TWO_PI)  # broadcast -> (TB, E)
    out_ref[:, 0:e] = jnp.sin(x_proj)
    out_ref[:, e : 2 * e] = jnp.cos(x_proj)


def _gfp_kernel_split(x_ref, w_ref, sin_ref, cos_ref):
    # Fallback for E not a multiple of 128: two lane-dense (TB, E) outputs,
    # concatenated in the wrapper (avoids masked stores at lane offset E).
    x_proj = x_ref[...] * (w_ref[...] * _TWO_PI)  # (TB, E)
    sin_ref[...] = jnp.sin(x_proj)
    cos_ref[...] = jnp.cos(x_proj)


def gaussian_fourier_projection(x, W, *, block_rows=512):
    """x: (B,) float; W: (E,) float -> (B, 2E) float32."""
    B = x.shape[0]
    E = W.shape[0]
    x2d = x.reshape(B, 1).astype(jnp.float32)
    w2d = W.reshape(1, E).astype(jnp.float32)

    # Batch tile: full batch if small, otherwise 512-row tiles (divisible by 8;
    # Pallas masks the ragged final block if B % block_rows != 0).
    tb = B if B <= block_rows else block_rows
    grid = (pl.cdiv(B, tb),)

    x_spec = pl.BlockSpec((tb, 1), lambda i: (i, 0))
    w_spec = pl.BlockSpec((1, E), lambda i: (0, 0))  # VMEM-resident across steps
    cparams = pltpu.CompilerParams(dimension_semantics=("parallel",))

    if E % 128 == 0:
        return pl.pallas_call(
            _gfp_kernel_aligned,
            out_shape=jax.ShapeDtypeStruct((B, 2 * E), jnp.float32),
            grid=grid,
            in_specs=[x_spec, w_spec],
            out_specs=pl.BlockSpec((tb, 2 * E), lambda i: (i, 0)),
            compiler_params=cparams,
        )(x2d, w2d)

    sin_o, cos_o = pl.pallas_call(
        _gfp_kernel_split,
        out_shape=(
            jax.ShapeDtypeStruct((B, E), jnp.float32),
            jax.ShapeDtypeStruct((B, E), jnp.float32),
        ),
        grid=grid,
        in_specs=[x_spec, w_spec],
        out_specs=(
            pl.BlockSpec((tb, E), lambda i: (i, 0)),
            pl.BlockSpec((tb, E), lambda i: (i, 0)),
        ),
        compiler_params=cparams,
    )(x2d, w2d)
    return jnp.concatenate([sin_o, cos_o], axis=-1)


def _reference(x, W):
    x_proj = x[:, None].astype(jnp.float32) * W[None, :].astype(jnp.float32) * _TWO_PI
    return jnp.concatenate([jnp.sin(x_proj), jnp.cos(x_proj)], axis=-1)


if __name__ == "__main__":
    key = jax.random.PRNGKey(0)
    k_w, k_x, k_w2 = jax.random.split(key, 3)

    # Small, module-consistent shapes: batch of 8 noise levels, embedding_size=128.
    B = 8
    embedding_size = 128
    scale = 1.0

    # Deterministic parameter init (matches torch.randn(embedding_size) * scale).
    W = jax.random.normal(k_w, (embedding_size,), dtype=jnp.float32) * scale
    x = jax.random.uniform(k_x, (B,), dtype=jnp.float32)

    out = gaussian_fourier_projection(x, W)
    out = jax.block_until_ready(out)
    ref = _reference(x, W)
    assert out.shape == (B, 2 * embedding_size)
    assert jnp.allclose(out, ref, atol=1e-5, rtol=1e-5)

    # Also exercise the lane-dense fallback path (E not a multiple of 128).
    E2 = 96
    W2 = jax.random.normal(k_w2, (E2,), dtype=jnp.float32) * scale
    out2 = jax.block_until_ready(gaussian_fourier_projection(x, W2))
    ref2 = _reference(x, W2)
    assert out2.shape == (B, 2 * E2)
    assert jnp.allclose(out2, ref2, atol=1e-5, rtol=1e-5)

    print("KERNEL_OK")
</pallas_src>

<mosaic_0001>
module attributes {stable_mosaic.version = 11 : i64} {
  func.func @_gfp_kernel_aligned(%arg0: i32, %arg1: memref<8x1xf32, #tpu.memory_space<vmem>>, %arg2: memref<1x128xf32, #tpu.memory_space<vmem>>, %arg3: memref<8x256xf32, #tpu.memory_space<vmem>>) attributes {dimension_semantics = [#tpu.dimension_semantics<parallel>], iteration_bounds = array<i64: 1>, scalar_prefetch = 0 : i64, scratch_operands = 0 : i64, tpu.core_type = #tpu.core_type<tc>, window_params = [{transform_indices = @transform_0, window_bounds = array<i64: 8, 1>}, {pipeline_mode = #tpu.pipeline_mode<synchronous>, transform_indices = @transform_1, window_bounds = array<i64: 1, 128>}, {transform_indices = @transform_2, window_bounds = array<i64: 8, 256>}]} {
    %c0 = arith.constant 0 : index
    %c0_0 = arith.constant 0 : index
    %0 = vector.load %arg1[%c0, %c0_0] : memref<8x1xf32, #tpu.memory_space<vmem>>, vector<8x1xf32>
    %c0_1 = arith.constant 0 : index
    %c0_2 = arith.constant 0 : index
    %1 = vector.load %arg2[%c0_1, %c0_2] : memref<1x128xf32, #tpu.memory_space<vmem>>, vector<1x128xf32>
    %cst = arith.constant 6.28318548 : f32
    %2 = vector.broadcast %cst : f32 to vector<1x128xf32>
    %3 = arith.mulf %1, %2 : vector<1x128xf32>
    %4 = vector.broadcast %0 : vector<8x1xf32> to vector<8x128xf32>
    %5 = vector.broadcast %3 : vector<1x128xf32> to vector<8x128xf32>
    %6 = arith.mulf %4, %5 : vector<8x128xf32>
    %7 = math.sin %6 : vector<8x128xf32>
    %c0_3 = arith.constant 0 : index
    %c0_4 = arith.constant 0 : index
    %8 = vector.load %arg3[%c0_3, %c0_4] : memref<8x256xf32, #tpu.memory_space<vmem>>, vector<8x128xf32>
    tpu.vector_store %arg3[%c0_3, %c0_4], %7 {strides = array<i32>} : memref<8x256xf32, #tpu.memory_space<vmem>>, vector<8x128xf32>,
    %9 = math.cos %6 : vector<8x128xf32>
    %c0_5 = arith.constant 0 : index
    %c128 = arith.constant 128 : index
    %10 = vector.load %arg3[%c0_5, %c128] : memref<8x256xf32, #tpu.memory_space<vmem>>, vector<8x128xf32>
    tpu.vector_store %arg3[%c0_5, %c128], %9 {strides = array<i32>} : memref<8x256xf32, #tpu.memory_space<vmem>>, vector<8x128xf32>,
    return
  }
  func.func @transform_0(%arg0: i32) -> (i32, i32) {
    %c0_i32 = arith.constant 0 : i32
    %c0_i32_0 = arith.constant 0 : i32
    return %arg0, %c0_i32 : i32, i32
  }
  func.func @transform_1(%arg0: i32) -> (i32, i32) {
    %c0_i32 = arith.constant 0 : i32
    %c0_i32_0 = arith.constant 0 : i32
    %c0_i32_1 = arith.constant 0 : i32
    return %c0_i32, %c0_i32_0 : i32, i32
  }
  func.func @transform_2(%arg0: i32) -> (i32, i32) {
    %c0_i32 = arith.constant 0 : i32
    %c0_i32_0 = arith.constant 0 : i32
    return %arg0, %c0_i32 : i32, i32
  }
}

</mosaic_0001>

<bundles_post_ra>
// kernel: tpu_custom_call.1
= control target key start
LH: loop header
LB: loop body
LE: loop exit
PB: predicated region body
PF: predicated region fallthrough
CT: control target
= control target key end

     0   :  { %v392_v1 = vmov 0   ;;  %s485_s0 = inlined_call_operand.vmem [shape: f32[8,1], index: 0, kind: input, shape index: {}]   ;;  %s486_s1 = inlined_call_operand.vmem [shape: f32[1,128], index: 1, kind: input, shape index: {}]   ;;  %s487_s2 = inlined_call_operand.hbm [shape: f32[8,256], index: 2, kind: output, shape index: {}]  }
   0x1   :  { %v12_v0 = vld [vmem:[%s485_s0] sm:$0xff]  ;;  %365 = vset.pattern.permute.xlu0 %v392_v1 }
   0x2   :  { %17 = vperm.xlu0 %365, %v12_v0  }
   0x3   :  { %7 = vsyncpa [#allocation3], 0  ;;  %v13_v2 = vld [vmem:[%s486_s1] sm:$0x1]  ;;  %v393_v18 = vmov 683565275  }
   0x4   :  { %v14_v3 = vmul.f32 6.2831855, %v13_v2  ;;  %v394_v20 = vmov 2475754826   ;;  %v395_v23 = vmov 2131351028  }
   0x5   :  { %v396_v26 = vmov 2102212464   ;;  %v397_v29 = vmov 920167782   ;;  %v398_v32 = vmov 1326507024  }
   0x6   :  { %v21_v4 = vperm.slane %v14_v3, 0  ;;  %s399_s0 = smov [#allocation2]   ;;  %s342_s15 = sshll.u32 %s487_s2, 4  ;;  %s343_s15 = int_to_ptr.hbm [resolvable:$true] %s342_s15 }
   0x7   :  { %s340_s1 = sshll.u32 %s399_s0, 4  ;;  %s341_s1 = int_to_ptr.vmem [resolvable:$true] %s340_s1 }
  0x74   :  { %v18_v5 = vpop.permute.xlu0 %17 }
  0x75   :  { %v422_v6 = vmul.f32 %v21_v4, %v18_v5 }
  0x77   :  { %v27_v7 = vand.u32 2139095040, %v422_v6  ;;  %v24_v10 = vand.u32 2147483647, %v422_v6  ;;  %vm26_vm12 = vcmp.lt.s32.totalorder %v422_v6, 0 }
  0x79   :  { %v28_v8 = vshrl.u32 %v27_v7, 23  ;;  %v31_v12 = vand.u32 8388607, %v24_v10  ;;  %vm25_vm13 = vcmp.le.f32.partialorder %v24_v10, 0.7853982 }
  0x7b   :  { %v351_v9 = vadd.s32 4294967169, %v28_v8  ;;  %v32_v16 = vor.u32 8388608, %v31_v12 }
  0x7d   :  { %v34_v11 = vadd.s32 1, %v351_v9  ;;  %v439_v39 = vshll.u32 %v32_v16, 8 }
  0x7f   :  { %vm35_vm0 = vcmp.gt.s32.totalorder %v34_v11, 0  ;;  %v73_v48 = vand.u32 65535, %v439_v39  ;;  %v74_v49 = vshrl.u32 %v439_v39, 16 }
  0x80   :  { %v36_v13 = vsel %vm35_vm0, %v34_v11, 0 }
  0x81   :  { %v38_v14 = vand.u32 31, %v36_v13  ;;  %v430_v17 = vshrl.u32 %v36_v13, 5 }
  0x83   :  { %v428_v15 = vsub.s32 32, %v38_v14  ;;  %v41_v19 = vshll.u32 %v393_v18, %v38_v14  ;;  %v44_v21 = vshll.u32 %v394_v20, %v38_v14  ;;  %v47_v25 = vshll.u32 %v395_v23, %v38_v14 }
  0x84   :  { %v50_v28 = vshll.u32 %v396_v26, %v38_v14  ;;  %v53_v31 = vshll.u32 %v397_v29, %v38_v14  ;;  %vm56_vm1 = vcmp.lt.s32.totalorder %v430_v17, 1  ;;  %vm59_vm2 = vcmp.lt.s32.totalorder %v430_v17, 4 }
  0x85   :  { %v42_v22 = vshrl.u32 %v394_v20, %v428_v15  ;;  %v45_v24 = vshrl.u32 %v395_v23, %v428_v15  ;;  %v48_v27 = vshrl.u32 %v396_v26, %v428_v15  ;;  %v51_v30 = vshrl.u32 %v397_v29, %v428_v15 }
  0x86   :  { %v54_v33 = vshrl.u32 %v398_v32, %v428_v15  ;;  %vm58_vm3 = vcmp.lt.s32.totalorder %v430_v17, 3  ;;  %vm57_vm4 = vcmp.lt.s32.totalorder %v430_v17, 2  ;;  %v40_v13 = vshrl.u32 %v393_v18, %v428_v15 }
  0x87   :  { %v43_v34 = vor.u32 %v42_v22, %v41_v19  ;;  %v46_v35 = vor.u32 %v45_v24, %v44_v21  ;;  %v49_v36 = vor.u32 %v48_v27, %v47_v25  ;;  %v52_v37 = vor.u32 %v51_v30, %v50_v28 }
  0x88   :  { %v55_v38 = vor.u32 %v54_v33, %v53_v31 }
  0x89   :  { %v64_v40 = vsel %vm56_vm1, %v43_v34, %v46_v35  ;;  %v68_v41 = vsel %vm56_vm1, %v46_v35, %v49_v36  ;;  %v65_v42 = vsel %vm59_vm2, %v52_v37, 920167782  ;;  %v61_v9 = vsel %vm59_vm2, %v49_v36, 2102212464 }
  0x8a   :  { %v69_v43 = vsel %vm59_vm2, %v55_v38, 1326507024  ;;  %v66_v44 = vsel %vm58_vm3, %v49_v36, %v65_v42  ;;  %v60_v22 = vsel %vm56_vm1, %v40_v13, %v43_v34  ;;  %v62_v23 = vsel %vm58_vm3, %v46_v35, %v61_v9 }
  0x8b   :  { %v70_v45 = vsel %vm58_vm3, %v52_v37, %v69_v43  ;;  %v67_v46 = vsel %vm57_vm4, %v64_v40, %v66_v44  ;;  %v63_v15 = vsel %vm57_vm4, %v60_v22, %v62_v23 }
  0x8c   :  { %v71_v47 = vsel %vm57_vm4, %v68_v41, %v70_v45  ;;  %v97_v52 = vand.u32 65535, %v67_v46  ;;  %v98_v53 = vshrl.u32 %v67_v46, 16  ;;  %v117_v30 = vmul.u32 %v439_v39, %v63_v15 }
  0x8d   :  { %v75_v50 = vand.u32 65535, %v71_v47  ;;  %v76_v51 = vshrl.u32 %v71_v47, 16  ;;  %vm167_vm4 = vweird.f32 %v422_v6 }
  0x8e   :  { %v100_v56 = vmul.u32 %v98_v53, %v73_v48  ;;  %v101_v57 = vmul.u32 %v97_v52, %v74_v49  ;;  %v99_v61 = vmul.u32 %v97_v52, %v73_v48  ;;  %v102_v2 = vmul.u32 %v98_v53, %v74_v49 }
  0x8f   :  { %v78_v54 = vmul.u32 %v76_v51, %v73_v48  ;;  %v79_v55 = vmul.u32 %v75_v50, %v74_v49  ;;  %v77_v58 = vmul.u32 %v75_v50, %v73_v48  ;;  %v80_v60 = vmul.u32 %v76_v51, %v74_v49 }
  0x90   :  { %v103_v62 = vshll.u32 %v100_v56, 16  ;;  %v105_v4 = vshll.u32 %v101_v57, 16  ;;  %v104_v20 = vshrl.u32 %v100_v56, 16  ;;  %v106_v26 = vshrl.u32 %v101_v57, 16 }
  0x91   :  { %v81_v59 = vshll.u32 %v78_v54, 16  ;;  %v83_v63 = vshll.u32 %v79_v55, 16  ;;  %v82_v14 = vshrl.u32 %v78_v54, 16  ;;  %v84_v24 = vshrl.u32 %v79_v55, 16 }
  0x92   :  { %vm107_vm6 = vc.u32 %v99_v61, %v103_v62  ;;  %v109_v5 = vadd.s32 %v103_v62, %v99_v61 }
  0x93   :  { %vm85_vm5 = vc.u32 %v77_v58, %v81_v59  ;;  %v87_v0 = vadd.s32 %v81_v59, %v77_v58  ;;  %v108_v8 = vsel %vm107_vm6, 1, %v392_v1 }
  0x94   :  { %v86_v3 = vsel %vm85_vm5, 1, %v392_v1  ;;  %v110_v12 = vadd.s32 %v108_v8, %v102_v2  ;;  %vm111_vm8 = vc.u32 %v109_v5, %v105_v4  ;;  %v113_v29 = vadd.s32 %v109_v5, %v105_v4 }
  0x95   :  { %v88_v7 = vadd.s32 %v86_v3, %v80_v60  ;;  %vm89_vm7 = vc.u32 %v87_v0, %v83_v63  ;;  %v112_v19 = vsel %vm111_vm8, 1, %v392_v1 }
  0x96   :  { %v90_v11 = vsel %vm89_vm7, 1, %v392_v1  ;;  %v114_v21 = vadd.s32 %v112_v19, %v110_v12 }
  0x97   :  { %v92_v16 = vadd.s32 %v90_v11, %v88_v7 }
  0x98   :  { %v115_v27 = vadd.s32 %v114_v21, %v104_v20 }
  0x99   :  { %v93_v25 = vadd.s32 %v92_v16, %v82_v14 }
  0x9a   :  { %v116_v18 = vadd.s32 %v115_v27, %v106_v26 }
  0x9b   :  { %v94_v28 = vadd.s32 %v93_v25, %v84_v24 }
  0x9c   :  { %v120_v1 = vadd.s32 1, %v116_v18 }
  0x9d   :  { %vm119_vm9 = vc.u32 %v94_v28, %v113_v29  ;;  %v118_v17 = vadd.s32 %v113_v29, %v94_v28 }
  0x9e   :  { %v121_v31 = vsel %vm119_vm9, %v120_v1, %v116_v18 }
  0x9f   :  { %v122_v32 = vadd.s32 %v121_v31, %v117_v30 }
  0xa1   :  { %v123_v33 = vadd.s32 536870912, %v122_v32 }
  0xa3   :  { %v124_v34 = vshrl.u32 %v123_v33, 30 }
  0xa5   :  { %v125_v36 = vshll.u32 %v124_v34, 30  ;;  %v148_v55 = vsub.s32 4, %v124_v34 }
  0xa7   :  { %v126_v35 = vsub.s32 %v122_v32, %v125_v36  ;;  %v149_v60 = vsel %vm26_vm12, %v148_v55, %v124_v34 }
  0xa8   :  { %v151_v63 = vsel %vm25_vm13, 0, %v149_v60 }
  0xa9   :  { %vm127_vm10 = vcmp.lt.s32.totalorder %v126_v35, 0  ;;  %v128_v37 = vsub.s32 0, %v126_v35  ;;  %v168_v5 = vadd.s32 3, %v151_v63  ;;  %v324_v11 = vand.u32 3, %v151_v63 }
  0xab   :  { %v129_v38 = vsel %vm127_vm10, %v128_v37, %v126_v35  ;;  %v169_v12 = vand.u32 3, %v168_v5  ;;  %vm325_vm14 = vcmp.lt.s32.totalorder %v324_v11, 2  ;;  %vm326_vm15 = vcmp.eq.s32.totalorder %v324_v11, 0 }
  0xac   :  { %v130_v40 = vclz %v129_v38  ;;  %vm329_vm3 = vcmp.eq.s32.totalorder %v324_v11, 2 }
  0xad   :  { %vm170_vm0 = vcmp.lt.s32.totalorder %v169_v12, 2  ;;  %vm171_vm1 = vcmp.eq.s32.totalorder %v169_v12, 0  ;;  %vm174_vm2 = vcmp.eq.s32.totalorder %v169_v12, 2 }
  0xae   :  { %v352_v41 = vadd.s32 4294967294, %v130_v40 }
  0xb0   :  { %vm353_vm11 = vcmp.lt.s32.totalorder %v352_v41, 0 }
  0xb1   :  { %v133_v42 = vsel %vm353_vm11, 0, %v352_v41 }
  0xb2   :  { %v134_v43 = vsub.s32 32, %v133_v42  ;;  %v138_v44 = vsub.s32 4294967266, %v133_v42  ;;  %v135_v45 = vshll.u32 %v126_v35, %v133_v42 }
  0xb4   :  { %v136_v46 = vshrl.u32 %v118_v17, %v134_v43  ;;  %v139_v47 = vadd.s32 127, %v138_v44 }
  0xb6   :  { %v137_v39 = vor.u32 %v136_v46, %v135_v45  ;;  %v140_v48 = vshll.u32 %v139_v47, 23 }
  0xb8   :  { %v141_v49 = vor.u32 4788187, %v140_v48  ;;  %v144_v51 = vcvt.s32.f32 %v137_v39 }
  0xba   :  { %v142_v50 = vand.u32 2147483647, %v141_v49 }
  0xbc   :  { %v145_v52 = vmul.f32 %v144_v51, %v142_v50 }
  0xbe   :  { %v146_v53 = vxor.u32 2147483648, %v145_v52 }
  0xc0   :  { %v147_v54 = vsel %vm26_vm12, %v146_v53, %v145_v52 }
  0xc1   :  { %v150_v56 = vsel %vm25_vm13, %v422_v6, %v147_v54 }
  0xc2   :  { %v152_v57 = vmul.f32 %v150_v56, %v150_v56 }
  0xc4   :  { %v153_v58 = vmul.f32 -0.001358992, %v152_v57  ;;  %v160_v59 = vmul.f32 -0.00019511016, %v152_v57 }
  0xc6   :  { %v154_v61 = vadd.f32 0.041655596, %v153_v58  ;;  %v161_v62 = vadd.f32 0.008332121, %v160_v59 }
  0xc8   :  { %v155_v0 = vmul.f32 %v154_v61, %v152_v57  ;;  %v162_v2 = vmul.f32 %v161_v62, %v152_v57 }
  0xca   :  { %v156_v3 = vadd.f32 -0.4999988, %v155_v0  ;;  %v163_v4 = vadd.f32 -0.16666654, %v162_v2 }
  0xcc   :  { %v157_v7 = vmul.f32 %v156_v3, %v152_v57  ;;  %v164_v8 = vmul.f32 %v163_v4, %v152_v57 }
  0xce   :  { %v158_v9 = vadd.f32 1.0, %v157_v7  ;;  %v165_v10 = vadd.f32 1.0, %v164_v8 }
  0xd0   :  { %v166_v13 = vmul.f32 %v165_v10, %v150_v56  ;;  %v175_v14 = vxor.u32 2147483648, %v158_v9 }
  0xd2   :  { %v172_v16 = vxor.u32 2147483648, %v166_v13  ;;  %v176_v20 = vsel %vm174_vm2, %v175_v14, %v166_v13  ;;  %v331_v22 = vsel %vm329_vm3, %v175_v14, %v166_v13 }
  0xd4   :  { %v173_v19 = vsel %vm171_vm1, %v158_v9, %v172_v16  ;;  %v328_v21 = vsel %vm326_vm15, %v158_v9, %v172_v16 }
  0xd5   :  { %v177_v23 = vsel %vm170_vm0, %v173_v19, %v176_v20  ;;  %v332_v24 = vsel %vm325_vm14, %v328_v21, %v331_v22 }
  0xd6   :  { %v178_v25 = vsel %vm167_vm4, nan, %v177_v23  ;;  %v333_v26 = vsel %vm167_vm4, nan, %v332_v24 }
  0xd7   :  { %179 = vst [vmem:[#allocation2] sm:$0xff] %v178_v25 }
  0xd8   :  { %334 = vst [vmem:[#allocation2 + $0x8] sm:$0xff] %v333_v26 }
  0xd9   :  { %345 = dma.vmem_to_hbm [thread:$0]  %s341_s1, 256, %s343_s15, [#allocation3]  }
  0xda   :  { %390 = dma.done.wait [#allocation3], 256  }
  0xdb   :  { %391 = vsyncadd [#allocation3], 4294967040 }
  0xdc   :  { %350 = vsyncpa [#allocation3], 1 }

</bundles_post_ra>
